<compile_context>
chip_gen: v5e
topology: v5e:2x2
jax: 0.10.0
libtpu: 0.0.40
codegen_flags: <defaults>
</compile_context>

<pallas_src>
import functools
import math

import jax
import jax.numpy as jnp
from jax.experimental import pallas as pl
from jax.experimental.pallas import tpu as pltpu


def _round_up(x, m):
    return ((x + m - 1) // m) * m


def _pad2(w, rows, cols):
    return jnp.pad(w, ((0, rows - w.shape[0]), (0, cols - w.shape[1])))


def _pick_tm(B):
    for tm in (256, 128, 64, 32, 16, 8):
        if B % tm == 0:
            return tm
    return B


# --------------------------------- kernel -----------------------------------
def _fused_flow_kernel(
    x1_ref, x2_ref,
    m11, m12, m21, m22, bva, bvb,                       # folded actnorm+invconv
    w1, b1, w2, b2, w3, b3, w4, b4, w5, b5,             # coupling block (bf16 W)
    w6s, b6s, w6c, b6c,                                 # last Linear pre-split
    z1_out, z2_out, ld_out,
    z1_sc, z2_sc, ld_sc,
):
    f32 = jnp.float32
    bf16 = jnp.bfloat16
    step = pl.program_id(1)

    @pl.when(step == 0)
    def _():
        z1_sc[...] = x1_ref[...]
        z2_sc[...] = x2_ref[...]
        ld_sc[...] = jnp.zeros_like(ld_sc)

    z1 = z1_sc[...]
    z2 = z2_sc[...]

    # ActNorm1d + InvertibleConv1x1, pre-folded into z_new = z @ M + b with M
    # split into 2x2 blocks so z1/z2 stay in separate lane-dense buffers.
    zn1 = (jnp.dot(z1, m11[...], preferred_element_type=f32)
           + jnp.dot(z2, m21[...], preferred_element_type=f32) + bva[...])
    zn2 = (jnp.dot(z1, m12[...], preferred_element_type=f32)
           + jnp.dot(z2, m22[...], preferred_element_type=f32) + bvb[...])

    # Coupling block (get_block_1d): 4x [Linear,ReLU], [Linear,Tanh], Linear.
    # bf16 matmuls with f32 accumulation; biases kept f32.
    h = zn1.astype(bf16)
    h = jnp.maximum(jnp.dot(h, w1[...], preferred_element_type=f32) + b1[...], 0.0).astype(bf16)
    h = jnp.maximum(jnp.dot(h, w2[...], preferred_element_type=f32) + b2[...], 0.0).astype(bf16)
    h = jnp.maximum(jnp.dot(h, w3[...], preferred_element_type=f32) + b3[...], 0.0).astype(bf16)
    h = jnp.maximum(jnp.dot(h, w4[...], preferred_element_type=f32) + b4[...], 0.0).astype(bf16)
    h = jnp.tanh(jnp.dot(h, w5[...], preferred_element_type=f32) + b5[...]).astype(bf16)

    # split_feature(h,'cross'): even cols -> shift, odd cols -> scale, realized
    # by pre-split weight matrices (no strided lane slicing in-kernel).
    shift = jnp.dot(h, w6s[...], preferred_element_type=f32) + b6s[...]
    scale = jax.nn.sigmoid(jnp.dot(h, w6c[...], preferred_element_type=f32) + b6c[...] + 2.0)

    zn2 = (zn2 + shift) * scale
    ld_sc[...] = ld_sc[...] + jnp.sum(jnp.log(scale), axis=1, keepdims=True)
    z1_sc[...] = zn1
    z2_sc[...] = zn2

    @pl.when(step == pl.num_programs(1) - 1)
    def _():
        z1_out[...] = zn1
        z2_out[...] = zn2
        ld_out[...] = ld_sc[...]


_PARAM_ORDER = ("m11", "m12", "m21", "m22", "bva", "bvb",
                "w1", "b1", "w2", "b2", "w3", "b3", "w4", "b4", "w5", "b5",
                "w6s", "b6s", "w6c", "b6c")


def _fused_flownet_call(x1, x2, fp, tm):
    B, c_half = x1.shape
    c2 = x2.shape[1]
    n_steps = fp["w1"].shape[0]
    grid = (B // tm, n_steps)

    def act_spec(cols):
        return pl.BlockSpec((tm, cols), lambda b, s: (b, 0))

    def p_spec(r, c):
        # step-indexed, leading step dim squeezed away in the kernel
        return pl.BlockSpec((None, r, c), lambda b, s: (s, 0, 0))

    params = [fp[k] for k in _PARAM_ORDER]
    in_specs = [act_spec(c_half), act_spec(c2)] + [
        p_spec(p.shape[1], p.shape[2]) for p in params
    ]
    out_shape = (
        jax.ShapeDtypeStruct((B, c_half), jnp.float32),
        jax.ShapeDtypeStruct((B, c2), jnp.float32),
        jax.ShapeDtypeStruct((B, 1), jnp.float32),
    )
    out_specs = (act_spec(c_half), act_spec(c2), act_spec(1))

    return pl.pallas_call(
        _fused_flow_kernel,
        grid=grid,
        in_specs=in_specs,
        out_specs=out_specs,
        out_shape=out_shape,
        scratch_shapes=[
            pltpu.VMEM((tm, c_half), jnp.float32),
            pltpu.VMEM((tm, c2), jnp.float32),
            pltpu.VMEM((tm, 1), jnp.float32),
        ],
        compiler_params=pltpu.CompilerParams(
            dimension_semantics=("parallel", "arbitrary"),
            vmem_limit_bytes=48 * 1024 * 1024,
        ),
    )(x1, x2, *params)


@jax.jit
def flownet_encode(x, fp, const_logdet):
    """FlowNet.forward(x, logdet=0.0, reverse=False) -> (z, logdet)."""
    B, C = x.shape
    c_half = C // 2
    x = x.astype(jnp.float32)
    x1, x2 = x[:, :c_half], x[:, c_half:]
    tm = _pick_tm(B)
    z1, z2, ld = _fused_flownet_call(x1, x2, fp, tm)
    z = jnp.concatenate([z1, z2], axis=1)
    return z, ld[:, 0] + const_logdet


# ----------------------------- parameter setup ------------------------------
def init_flownet_1d(key, C, hidden, K, L):
    """Deterministic synthetic params for FlowNet(image_shape=(C,), hidden_channels=hidden,
    K=K, L=L, actnorm_scale=1.0, flow_permutation='invconv', flow_coupling='affine',
    LU_decomposed=False, is_1d=True, condition_features=0)."""
    c_half = C // 2
    c2 = C - c_half
    dims = [(c_half, hidden)] + [(hidden, hidden)] * 4 + [(hidden, 2 * c2)]
    steps = []
    for _ in range(K * L):          # 1-D FlowNet is just K*L FlowSteps
        key, *ks = jax.random.split(key, 16)
        ks = iter(ks)
        p = {}
        # ActNorm1d (data-dependent init in torch; deterministic synthetic here)
        p["an_bias"] = 0.1 * jax.random.normal(next(ks), (1, C), jnp.float32)
        p["an_logs"] = 0.1 * jax.random.normal(next(ks), (1, C), jnp.float32)
        # InvertibleConv1x1: random rotation (Glow init), LU_decomposed=False.
        w = jnp.linalg.qr(jax.random.normal(next(ks), (C, C), jnp.float32))[0]
        p["w_inv"] = w.astype(jnp.float32)
        # get_block_1d Linears: torch stores (out,in) and applies x @ W.T; we
        # generate (in,out) directly and apply x @ W (same distribution).
        ws, bs = [], []
        for (fi, fo) in dims:
            bound = 1.0 / math.sqrt(fi)
            ws.append(jax.random.uniform(next(ks), (fi, fo), jnp.float32, -bound, bound))
            bs.append(jax.random.uniform(next(ks), (1, fo), jnp.float32, -bound, bound))
        p["ws"], p["bs"] = ws, bs
        steps.append(p)
    return steps


def prepare_fused(steps, C, hidden):
    """Fold ActNorm into the 1x1 conv, pre-split matrices, pad hidden to a
    multiple of 128, cast coupling weights to bf16, stack along a step axis."""
    c_half = C // 2
    c2 = C - c_half
    Hp = _round_up(hidden, 128)
    acc = {k: [] for k in _PARAM_ORDER}
    const_ld = jnp.float32(0.0)
    for p in steps:
        s = jnp.exp(p["an_logs"])                       # (1, C)
        M = s.reshape(C, 1) * p["w_inv"].T              # z_new = z_in @ M + bv
        bv = (p["an_bias"] * s) @ p["w_inv"].T          # (1, C)
        const_ld = const_ld + jnp.sum(p["an_logs"]) + jnp.linalg.slogdet(p["w_inv"])[1]
        acc["m11"].append(M[:c_half, :c_half])
        acc["m12"].append(M[:c_half, c_half:])
        acc["m21"].append(M[c_half:, :c_half])
        acc["m22"].append(M[c_half:, c_half:])
        acc["bva"].append(bv[:, :c_half])
        acc["bvb"].append(bv[:, c_half:])
        ws, bs = p["ws"], p["bs"]
        acc["w1"].append(_pad2(ws[0], c_half, Hp).astype(jnp.bfloat16))
        acc["b1"].append(_pad2(bs[0], 1, Hp))
        for i in range(1, 5):
            acc[f"w{i + 1}"].append(_pad2(ws[i], Hp, Hp).astype(jnp.bfloat16))
            acc[f"b{i + 1}"].append(_pad2(bs[i], 1, Hp))
        w6, b6 = ws[5], bs[5]
        acc["w6s"].append(_pad2(w6[:, 0::2], Hp, c2).astype(jnp.bfloat16))
        acc["b6s"].append(b6[:, 0::2])
        acc["w6c"].append(_pad2(w6[:, 1::2], Hp, c2).astype(jnp.bfloat16))
        acc["b6c"].append(b6[:, 1::2])
    fp = {k: jnp.stack(v) for k, v in acc.items()}
    return fp, const_ld


# ----------------------- pure-JAX reference (verification) ------------------
def _flowstep_ref(z, ld, p):
    C = z.shape[1]
    c_half = C // 2
    z = (z + p["an_bias"]) * jnp.exp(p["an_logs"])
    ld = ld + jnp.sum(p["an_logs"])
    z = z @ p["w_inv"].T
    ld = ld + jnp.linalg.slogdet(p["w_inv"])[1]
    z1, z2 = z[:, :c_half], z[:, c_half:]
    h = z1
    for i in range(4):
        h = jnp.maximum(h @ p["ws"][i] + p["bs"][i], 0.0)
    h = jnp.tanh(h @ p["ws"][4] + p["bs"][4])
    h = h @ p["ws"][5] + p["bs"][5]
    shift, scale = h[:, 0::2], h[:, 1::2]
    scale = jax.nn.sigmoid(scale + 2.0)
    z2 = (z2 + shift) * scale
    ld = ld + jnp.sum(jnp.log(scale), axis=1)
    return jnp.concatenate([z1, z2], axis=1), ld


def flownet_encode_ref(x, steps):
    z = x.astype(jnp.float32)
    ld = jnp.zeros((x.shape[0],), jnp.float32)
    for p in steps:
        z, ld = _flowstep_ref(z, ld, p)
    return z, ld


if __name__ == "__main__":
    B, C, HIDDEN, K, L = 8, 16, 32, 2, 2
    key = jax.random.PRNGKey(0)
    kx, kp = jax.random.split(key)
    x = jax.random.normal(kx, (B, C), jnp.float32)

    raw_params = init_flownet_1d(kp, C, HIDDEN, K, L)
    fp, const_ld = prepare_fused(raw_params, C, HIDDEN)

    z, logdet = flownet_encode(x, fp, const_ld)
    (z, logdet) = jax.block_until_ready((z, logdet))

    z_ref, logdet_ref = flownet_encode_ref(x, raw_params)
    assert z.shape == (B, C) and logdet.shape == (B,)
    assert jnp.allclose(z, z_ref, atol=5e-2, rtol=5e-2), "z mismatch vs reference"
    assert jnp.allclose(logdet, logdet_ref, atol=5e-2, rtol=5e-2), "logdet mismatch vs reference"
    print("KERNEL_OK")
</pallas_src>

<mosaic_0001>
module attributes {stable_mosaic.version = 11 : i64} {
  func.func @_fused_flow_kernel(%arg0: i32, %arg1: i32, %arg2: memref<8x8xf32, #tpu.memory_space<vmem>>, %arg3: memref<8x8xf32, #tpu.memory_space<vmem>>, %arg4: memref<1x8x8xf32, #tpu.memory_space<vmem>>, %arg5: memref<1x8x8xf32, #tpu.memory_space<vmem>>, %arg6: memref<1x8x8xf32, #tpu.memory_space<vmem>>, %arg7: memref<1x8x8xf32, #tpu.memory_space<vmem>>, %arg8: memref<1x1x8xf32, #tpu.memory_space<vmem>>, %arg9: memref<1x1x8xf32, #tpu.memory_space<vmem>>, %arg10: memref<1x8x128xbf16, #tpu.memory_space<vmem>>, %arg11: memref<1x1x128xf32, #tpu.memory_space<vmem>>, %arg12: memref<1x128x128xbf16, #tpu.memory_space<vmem>>, %arg13: memref<1x1x128xf32, #tpu.memory_space<vmem>>, %arg14: memref<1x128x128xbf16, #tpu.memory_space<vmem>>, %arg15: memref<1x1x128xf32, #tpu.memory_space<vmem>>, %arg16: memref<1x128x128xbf16, #tpu.memory_space<vmem>>, %arg17: memref<1x1x128xf32, #tpu.memory_space<vmem>>, %arg18: memref<1x128x128xbf16, #tpu.memory_space<vmem>>, %arg19: memref<1x1x128xf32, #tpu.memory_space<vmem>>, %arg20: memref<1x128x8xbf16, #tpu.memory_space<vmem>>, %arg21: memref<1x1x8xf32, #tpu.memory_space<vmem>>, %arg22: memref<1x128x8xbf16, #tpu.memory_space<vmem>>, %arg23: memref<1x1x8xf32, #tpu.memory_space<vmem>>, %arg24: memref<8x8xf32, #tpu.memory_space<vmem>>, %arg25: memref<8x8xf32, #tpu.memory_space<vmem>>, %arg26: memref<8x1xf32, #tpu.memory_space<vmem>>, %arg27: memref<8x8xf32, #tpu.memory_space<vmem>>, %arg28: memref<8x8xf32, #tpu.memory_space<vmem>>, %arg29: memref<8x1xf32, #tpu.memory_space<vmem>>) attributes {dimension_semantics = [#tpu.dimension_semantics<parallel>, #tpu.dimension_semantics<arbitrary>], iteration_bounds = array<i64: 1, 4>, scalar_prefetch = 0 : i64, scratch_operands = 3 : i64, tpu.core_type = #tpu.core_type<tc>, window_params = [{transform_indices = @transform_0, window_bounds = array<i64: 8, 8>}, {transform_indices = @transform_1, window_bounds = array<i64: 8, 8>}, {transform_indices = @transform_2, window_bounds = array<i64: 1, 8, 8>}, {transform_indices = @transform_3, window_bounds = array<i64: 1, 8, 8>}, {transform_indices = @transform_4, window_bounds = array<i64: 1, 8, 8>}, {transform_indices = @transform_5, window_bounds = array<i64: 1, 8, 8>}, {transform_indices = @transform_6, window_bounds = array<i64: 1, 1, 8>}, {transform_indices = @transform_7, window_bounds = array<i64: 1, 1, 8>}, {transform_indices = @transform_8, window_bounds = array<i64: 1, 8, 128>}, {transform_indices = @transform_9, window_bounds = array<i64: 1, 1, 128>}, {transform_indices = @transform_10, window_bounds = array<i64: 1, 128, 128>}, {transform_indices = @transform_11, window_bounds = array<i64: 1, 1, 128>}, {transform_indices = @transform_12, window_bounds = array<i64: 1, 128, 128>}, {transform_indices = @transform_13, window_bounds = array<i64: 1, 1, 128>}, {transform_indices = @transform_14, window_bounds = array<i64: 1, 128, 128>}, {transform_indices = @transform_15, window_bounds = array<i64: 1, 1, 128>}, {transform_indices = @transform_16, window_bounds = array<i64: 1, 128, 128>}, {transform_indices = @transform_17, window_bounds = array<i64: 1, 1, 128>}, {transform_indices = @transform_18, window_bounds = array<i64: 1, 128, 8>}, {transform_indices = @transform_19, window_bounds = array<i64: 1, 1, 8>}, {transform_indices = @transform_20, window_bounds = array<i64: 1, 128, 8>}, {transform_indices = @transform_21, window_bounds = array<i64: 1, 1, 8>}, {transform_indices = @transform_22, window_bounds = array<i64: 8, 8>}, {transform_indices = @transform_23, window_bounds = array<i64: 8, 8>}, {transform_indices = @transform_24, window_bounds = array<i64: 8, 1>}]} {
    %c0_i32 = arith.constant 0 : i32
    %0 = arith.cmpi eq, %arg1, %c0_i32 : i32
    %1 = arith.extui %0 : i1 to i32
    %c0_i32_0 = arith.constant 0 : i32
    %2 = arith.cmpi ne, %1, %c0_i32_0 : i32
    scf.if %2 {
      %c0_90 = arith.constant 0 : index
      %c0_91 = arith.constant 0 : index
      %111 = vector.load %arg2[%c0_90, %c0_91] : memref<8x8xf32, #tpu.memory_space<vmem>>, vector<8x8xf32>
      %c0_92 = arith.constant 0 : index
      %c0_93 = arith.constant 0 : index
      %112 = vector.load %arg27[%c0_92, %c0_93] : memref<8x8xf32, #tpu.memory_space<vmem>>, vector<8x8xf32>
      tpu.vector_store %arg27[%c0_92, %c0_93], %111 {strides = array<i32>} : memref<8x8xf32, #tpu.memory_space<vmem>>, vector<8x8xf32>,
      %c0_94 = arith.constant 0 : index
      %c0_95 = arith.constant 0 : index
      %113 = vector.load %arg3[%c0_94, %c0_95] : memref<8x8xf32, #tpu.memory_space<vmem>>, vector<8x8xf32>
      %c0_96 = arith.constant 0 : index
      %c0_97 = arith.constant 0 : index
      %114 = vector.load %arg28[%c0_96, %c0_97] : memref<8x8xf32, #tpu.memory_space<vmem>>, vector<8x8xf32>
      tpu.vector_store %arg28[%c0_96, %c0_97], %113 {strides = array<i32>} : memref<8x8xf32, #tpu.memory_space<vmem>>, vector<8x8xf32>,
      %cst_98 = arith.constant 0.000000e+00 : f32
      %115 = vector.broadcast %cst_98 : f32 to vector<8x1xf32>
      %c0_99 = arith.constant 0 : index
      %c0_100 = arith.constant 0 : index
      %116 = vector.load %arg29[%c0_99, %c0_100] : memref<8x1xf32, #tpu.memory_space<vmem>>, vector<8x1xf32>
      tpu.vector_store %arg29[%c0_99, %c0_100], %115 {strides = array<i32>} : memref<8x1xf32, #tpu.memory_space<vmem>>, vector<8x1xf32>,
    } else {
    }
    %c0 = arith.constant 0 : index
    %c0_1 = arith.constant 0 : index
    %3 = vector.load %arg27[%c0, %c0_1] : memref<8x8xf32, #tpu.memory_space<vmem>>, vector<8x8xf32>
    %c0_2 = arith.constant 0 : index
    %c0_3 = arith.constant 0 : index
    %4 = vector.load %arg28[%c0_2, %c0_3] : memref<8x8xf32, #tpu.memory_space<vmem>>, vector<8x8xf32>
    %c0_4 = arith.constant 0 : index
    %c0_5 = arith.constant 0 : index
    %c0_6 = arith.constant 0 : index
    %5 = vector.load %arg4[%c0_4, %c0_5, %c0_6] : memref<1x8x8xf32, #tpu.memory_space<vmem>>, vector<1x8x8xf32>
    %6 = vector.shape_cast %5 : vector<1x8x8xf32> to vector<8x8xf32>
    %cst = arith.constant dense<0.000000e+00> : vector<8x8xf32>
    %7 = tpu.matmul %3, %6, %cst {dimension_numbers = #tpu.dot_dimension_numbers<[1], [0], [0], [1], [0, 0, 1, 1], [], []>} : vector<8x8xf32>, vector<8x8xf32>, vector<8x8xf32> -> vector<8x8xf32>
    %c0_7 = arith.constant 0 : index
    %c0_8 = arith.constant 0 : index
    %c0_9 = arith.constant 0 : index
    %8 = vector.load %arg6[%c0_7, %c0_8, %c0_9] : memref<1x8x8xf32, #tpu.memory_space<vmem>>, vector<1x8x8xf32>
    %9 = vector.shape_cast %8 : vector<1x8x8xf32> to vector<8x8xf32>
    %cst_10 = arith.constant dense<0.000000e+00> : vector<8x8xf32>
    %10 = tpu.matmul %4, %9, %cst_10 {dimension_numbers = #tpu.dot_dimension_numbers<[1], [0], [0], [1], [0, 0, 1, 1], [], []>} : vector<8x8xf32>, vector<8x8xf32>, vector<8x8xf32> -> vector<8x8xf32>
    %11 = arith.addf %7, %10 : vector<8x8xf32>
    %c0_11 = arith.constant 0 : index
    %c0_12 = arith.constant 0 : index
    %c0_13 = arith.constant 0 : index
    %12 = vector.load %arg8[%c0_11, %c0_12, %c0_13] : memref<1x1x8xf32, #tpu.memory_space<vmem>>, vector<1x1x8xf32>
    %13 = vector.shape_cast %12 : vector<1x1x8xf32> to vector<1x8xf32>
    %14 = vector.broadcast %13 : vector<1x8xf32> to vector<8x8xf32>
    %15 = arith.addf %11, %14 : vector<8x8xf32>
    %c0_14 = arith.constant 0 : index
    %c0_15 = arith.constant 0 : index
    %c0_16 = arith.constant 0 : index
    %16 = vector.load %arg5[%c0_14, %c0_15, %c0_16] : memref<1x8x8xf32, #tpu.memory_space<vmem>>, vector<1x8x8xf32>
    %17 = vector.shape_cast %16 : vector<1x8x8xf32> to vector<8x8xf32>
    %cst_17 = arith.constant dense<0.000000e+00> : vector<8x8xf32>
    %18 = tpu.matmul %3, %17, %cst_17 {dimension_numbers = #tpu.dot_dimension_numbers<[1], [0], [0], [1], [0, 0, 1, 1], [], []>} : vector<8x8xf32>, vector<8x8xf32>, vector<8x8xf32> -> vector<8x8xf32>
    %c0_18 = arith.constant 0 : index
    %c0_19 = arith.constant 0 : index
    %c0_20 = arith.constant 0 : index
    %19 = vector.load %arg7[%c0_18, %c0_19, %c0_20] : memref<1x8x8xf32, #tpu.memory_space<vmem>>, vector<1x8x8xf32>
    %20 = vector.shape_cast %19 : vector<1x8x8xf32> to vector<8x8xf32>
    %cst_21 = arith.constant dense<0.000000e+00> : vector<8x8xf32>
    %21 = tpu.matmul %4, %20, %cst_21 {dimension_numbers = #tpu.dot_dimension_numbers<[1], [0], [0], [1], [0, 0, 1, 1], [], []>} : vector<8x8xf32>, vector<8x8xf32>, vector<8x8xf32> -> vector<8x8xf32>
    %22 = arith.addf %18, %21 : vector<8x8xf32>
    %c0_22 = arith.constant 0 : index
    %c0_23 = arith.constant 0 : index
    %c0_24 = arith.constant 0 : index
    %23 = vector.load %arg9[%c0_22, %c0_23, %c0_24] : memref<1x1x8xf32, #tpu.memory_space<vmem>>, vector<1x1x8xf32>
    %24 = vector.shape_cast %23 : vector<1x1x8xf32> to vector<1x8xf32>
    %25 = vector.broadcast %24 : vector<1x8xf32> to vector<8x8xf32>
    %26 = arith.addf %22, %25 : vector<8x8xf32>
    %27 = arith.truncf %15 : vector<8x8xf32> to vector<8x8xbf16>
    %c0_25 = arith.constant 0 : index
    %c0_26 = arith.constant 0 : index
    %c0_27 = arith.constant 0 : index
    %28 = vector.load %arg10[%c0_25, %c0_26, %c0_27] : memref<1x8x128xbf16, #tpu.memory_space<vmem>>, vector<1x8x128xbf16>
    %29 = vector.shape_cast %28 : vector<1x8x128xbf16> to vector<8x128xbf16>
    %cst_28 = arith.constant dense<0.000000e+00> : vector<8x128xf32>
    %30 = tpu.matmul %27, %29, %cst_28 {dimension_numbers = #tpu.dot_dimension_numbers<[1], [0], [0], [1], [0, 0, 1, 1], [], []>} : vector<8x8xbf16>, vector<8x128xbf16>, vector<8x128xf32> -> vector<8x128xf32>
    %c0_29 = arith.constant 0 : index
    %c0_30 = arith.constant 0 : index
    %c0_31 = arith.constant 0 : index
    %31 = vector.load %arg11[%c0_29, %c0_30, %c0_31] : memref<1x1x128xf32, #tpu.memory_space<vmem>>, vector<1x1x128xf32>
    %32 = vector.shape_cast %31 : vector<1x1x128xf32> to vector<1x128xf32>
    %33 = vector.broadcast %32 : vector<1x128xf32> to vector<8x128xf32>
    %34 = arith.addf %30, %33 : vector<8x128xf32>
    %cst_32 = arith.constant 0.000000e+00 : f32
    %35 = vector.broadcast %cst_32 : f32 to vector<8x128xf32>
    %36 = arith.maximumf %34, %35 : vector<8x128xf32>
    %37 = arith.truncf %36 : vector<8x128xf32> to vector<8x128xbf16>
    %c0_33 = arith.constant 0 : index
    %c0_34 = arith.constant 0 : index
    %c0_35 = arith.constant 0 : index
    %38 = vector.load %arg12[%c0_33, %c0_34, %c0_35] : memref<1x128x128xbf16, #tpu.memory_space<vmem>>, vector<1x128x128xbf16>
    %39 = vector.shape_cast %38 : vector<1x128x128xbf16> to vector<128x128xbf16>
    %cst_36 = arith.constant dense<0.000000e+00> : vector<8x128xf32>
    %40 = tpu.matmul %37, %39, %cst_36 {dimension_numbers = #tpu.dot_dimension_numbers<[1], [0], [0], [1], [0, 0, 1, 1], [], []>} : vector<8x128xbf16>, vector<128x128xbf16>, vector<8x128xf32> -> vector<8x128xf32>
    %c0_37 = arith.constant 0 : index
    %c0_38 = arith.constant 0 : index
    %c0_39 = arith.constant 0 : index
    %41 = vector.load %arg13[%c0_37, %c0_38, %c0_39] : memref<1x1x128xf32, #tpu.memory_space<vmem>>, vector<1x1x128xf32>
    %42 = vector.shape_cast %41 : vector<1x1x128xf32> to vector<1x128xf32>
    %43 = vector.broadcast %42 : vector<1x128xf32> to vector<8x128xf32>
    %44 = arith.addf %40, %43 : vector<8x128xf32>
    %cst_40 = arith.constant 0.000000e+00 : f32
    %45 = vector.broadcast %cst_40 : f32 to vector<8x128xf32>
    %46 = arith.maximumf %44, %45 : vector<8x128xf32>
    %47 = arith.truncf %46 : vector<8x128xf32> to vector<8x128xbf16>
    %c0_41 = arith.constant 0 : index
    %c0_42 = arith.constant 0 : index
    %c0_43 = arith.constant 0 : index
    %48 = vector.load %arg14[%c0_41, %c0_42, %c0_43] : memref<1x128x128xbf16, #tpu.memory_space<vmem>>, vector<1x128x128xbf16>
    %49 = vector.shape_cast %48 : vector<1x128x128xbf16> to vector<128x128xbf16>
    %cst_44 = arith.constant dense<0.000000e+00> : vector<8x128xf32>
    %50 = tpu.matmul %47, %49, %cst_44 {dimension_numbers = #tpu.dot_dimension_numbers<[1], [0], [0], [1], [0, 0, 1, 1], [], []>} : vector<8x128xbf16>, vector<128x128xbf16>, vector<8x128xf32> -> vector<8x128xf32>
    %c0_45 = arith.constant 0 : index
    %c0_46 = arith.constant 0 : index
    %c0_47 = arith.constant 0 : index
    %51 = vector.load %arg15[%c0_45, %c0_46, %c0_47] : memref<1x1x128xf32, #tpu.memory_space<vmem>>, vector<1x1x128xf32>
    %52 = vector.shape_cast %51 : vector<1x1x128xf32> to vector<1x128xf32>
    %53 = vector.broadcast %52 : vector<1x128xf32> to vector<8x128xf32>
    %54 = arith.addf %50, %53 : vector<8x128xf32>
    %cst_48 = arith.constant 0.000000e+00 : f32
    %55 = vector.broadcast %cst_48 : f32 to vector<8x128xf32>
    %56 = arith.maximumf %54, %55 : vector<8x128xf32>
    %57 = arith.truncf %56 : vector<8x128xf32> to vector<8x128xbf16>
    %c0_49 = arith.constant 0 : index
    %c0_50 = arith.constant 0 : index
    %c0_51 = arith.constant 0 : index
    %58 = vector.load %arg16[%c0_49, %c0_50, %c0_51] : memref<1x128x128xbf16, #tpu.memory_space<vmem>>, vector<1x128x128xbf16>
    %59 = vector.shape_cast %58 : vector<1x128x128xbf16> to vector<128x128xbf16>
    %cst_52 = arith.constant dense<0.000000e+00> : vector<8x128xf32>
    %60 = tpu.matmul %57, %59, %cst_52 {dimension_numbers = #tpu.dot_dimension_numbers<[1], [0], [0], [1], [0, 0, 1, 1], [], []>} : vector<8x128xbf16>, vector<128x128xbf16>, vector<8x128xf32> -> vector<8x128xf32>
    %c0_53 = arith.constant 0 : index
    %c0_54 = arith.constant 0 : index
    %c0_55 = arith.constant 0 : index
    %61 = vector.load %arg17[%c0_53, %c0_54, %c0_55] : memref<1x1x128xf32, #tpu.memory_space<vmem>>, vector<1x1x128xf32>
    %62 = vector.shape_cast %61 : vector<1x1x128xf32> to vector<1x128xf32>
    %63 = vector.broadcast %62 : vector<1x128xf32> to vector<8x128xf32>
    %64 = arith.addf %60, %63 : vector<8x128xf32>
    %cst_56 = arith.constant 0.000000e+00 : f32
    %65 = vector.broadcast %cst_56 : f32 to vector<8x128xf32>
    %66 = arith.maximumf %64, %65 : vector<8x128xf32>
    %67 = arith.truncf %66 : vector<8x128xf32> to vector<8x128xbf16>
    %c0_57 = arith.constant 0 : index
    %c0_58 = arith.constant 0 : index
    %c0_59 = arith.constant 0 : index
    %68 = vector.load %arg18[%c0_57, %c0_58, %c0_59] : memref<1x128x128xbf16, #tpu.memory_space<vmem>>, vector<1x128x128xbf16>
    %69 = vector.shape_cast %68 : vector<1x128x128xbf16> to vector<128x128xbf16>
    %cst_60 = arith.constant dense<0.000000e+00> : vector<8x128xf32>
    %70 = tpu.matmul %67, %69, %cst_60 {dimension_numbers = #tpu.dot_dimension_numbers<[1], [0], [0], [1], [0, 0, 1, 1], [], []>} : vector<8x128xbf16>, vector<128x128xbf16>, vector<8x128xf32> -> vector<8x128xf32>
    %c0_61 = arith.constant 0 : index
    %c0_62 = arith.constant 0 : index
    %c0_63 = arith.constant 0 : index
    %71 = vector.load %arg19[%c0_61, %c0_62, %c0_63] : memref<1x1x128xf32, #tpu.memory_space<vmem>>, vector<1x1x128xf32>
    %72 = vector.shape_cast %71 : vector<1x1x128xf32> to vector<1x128xf32>
    %73 = vector.broadcast %72 : vector<1x128xf32> to vector<8x128xf32>
    %74 = arith.addf %70, %73 : vector<8x128xf32>
    %75 = math.tanh %74 : vector<8x128xf32>
    %76 = arith.truncf %75 : vector<8x128xf32> to vector<8x128xbf16>
    %c0_64 = arith.constant 0 : index
    %c0_65 = arith.constant 0 : index
    %c0_66 = arith.constant 0 : index
    %77 = vector.load %arg20[%c0_64, %c0_65, %c0_66] : memref<1x128x8xbf16, #tpu.memory_space<vmem>>, vector<1x128x8xbf16>
    %78 = vector.shape_cast %77 : vector<1x128x8xbf16> to vector<128x8xbf16>
    %cst_67 = arith.constant dense<0.000000e+00> : vector<8x8xf32>
    %79 = tpu.matmul %76, %78, %cst_67 {dimension_numbers = #tpu.dot_dimension_numbers<[1], [0], [0], [1], [0, 0, 1, 1], [], []>} : vector<8x128xbf16>, vector<128x8xbf16>, vector<8x8xf32> -> vector<8x8xf32>
    %c0_68 = arith.constant 0 : index
    %c0_69 = arith.constant 0 : index
    %c0_70 = arith.constant 0 : index
    %80 = vector.load %arg21[%c0_68, %c0_69, %c0_70] : memref<1x1x8xf32, #tpu.memory_space<vmem>>, vector<1x1x8xf32>
    %81 = vector.shape_cast %80 : vector<1x1x8xf32> to vector<1x8xf32>
    %82 = vector.broadcast %81 : vector<1x8xf32> to vector<8x8xf32>
    %83 = arith.addf %79, %82 : vector<8x8xf32>
    %c0_71 = arith.constant 0 : index
    %c0_72 = arith.constant 0 : index
    %c0_73 = arith.constant 0 : index
    %84 = vector.load %arg22[%c0_71, %c0_72, %c0_73] : memref<1x128x8xbf16, #tpu.memory_space<vmem>>, vector<1x128x8xbf16>
    %85 = vector.shape_cast %84 : vector<1x128x8xbf16> to vector<128x8xbf16>
    %cst_74 = arith.constant dense<0.000000e+00> : vector<8x8xf32>
    %86 = tpu.matmul %76, %85, %cst_74 {dimension_numbers = #tpu.dot_dimension_numbers<[1], [0], [0], [1], [0, 0, 1, 1], [], []>} : vector<8x128xbf16>, vector<128x8xbf16>, vector<8x8xf32> -> vector<8x8xf32>
    %c0_75 = arith.constant 0 : index
    %c0_76 = arith.constant 0 : index
    %c0_77 = arith.constant 0 : index
    %87 = vector.load %arg23[%c0_75, %c0_76, %c0_77] : memref<1x1x8xf32, #tpu.memory_space<vmem>>, vector<1x1x8xf32>
    %88 = vector.shape_cast %87 : vector<1x1x8xf32> to vector<1x8xf32>
    %89 = vector.broadcast %88 : vector<1x8xf32> to vector<8x8xf32>
    %90 = arith.addf %86, %89 : vector<8x8xf32>
    %cst_78 = arith.constant 2.000000e+00 : f32
    %91 = vector.broadcast %cst_78 : f32 to vector<8x8xf32>
    %92 = arith.addf %90, %91 : vector<8x8xf32>
    %93 = arith.negf %92 : vector<8x8xf32>
    %94 = math.exp %93 : vector<8x8xf32>
    %cst_79 = arith.constant 1.000000e+00 : f32
    %95 = vector.broadcast %cst_79 : f32 to vector<8x8xf32>
    %96 = arith.addf %95, %94 : vector<8x8xf32>
    %97 = arith.divf %95, %96 : vector<8x8xf32>
    %98 = arith.addf %26, %83 : vector<8x8xf32>
    %99 = arith.mulf %98, %97 : vector<8x8xf32>
    %c0_80 = arith.constant 0 : index
    %c0_81 = arith.constant 0 : index
    %100 = vector.load %arg29[%c0_80, %c0_81] : memref<8x1xf32, #tpu.memory_space<vmem>>, vector<8x1xf32>
    %101 = math.log %97 : vector<8x8xf32>
    %cst_82 = arith.constant dense<0.000000e+00> : vector<8xf32>
    %102 = vector.multi_reduction <add>, %101, %cst_82 [1] : vector<8x8xf32> to vector<8xf32>
    %103 = vector.shape_cast %102 : vector<8xf32> to vector<8x1xf32>
    %104 = arith.addf %100, %103 : vector<8x1xf32>
    %c0_83 = arith.constant 0 : index
    %c0_84 = arith.constant 0 : index
    %105 = vector.load %arg29[%c0_83, %c0_84] : memref<8x1xf32, #tpu.memory_space<vmem>>, vector<8x1xf32>
    tpu.vector_store %arg29[%c0_83, %c0_84], %104 {strides = array<i32>} : memref<8x1xf32, #tpu.memory_space<vmem>>, vector<8x1xf32>,
    %c0_85 = arith.constant 0 : index
    %c0_86 = arith.constant 0 : index
    %106 = vector.load %arg27[%c0_85, %c0_86] : memref<8x8xf32, #tpu.memory_space<vmem>>, vector<8x8xf32>
    tpu.vector_store %arg27[%c0_85, %c0_86], %15 {strides = array<i32>} : memref<8x8xf32, #tpu.memory_space<vmem>>, vector<8x8xf32>,
    %c0_87 = arith.constant 0 : index
    %c0_88 = arith.constant 0 : index
    %107 = vector.load %arg28[%c0_87, %c0_88] : memref<8x8xf32, #tpu.memory_space<vmem>>, vector<8x8xf32>
    tpu.vector_store %arg28[%c0_87, %c0_88], %99 {strides = array<i32>} : memref<8x8xf32, #tpu.memory_space<vmem>>, vector<8x8xf32>,
    %c3_i32 = arith.constant 3 : i32
    %108 = arith.cmpi eq, %arg1, %c3_i32 : i32
    %109 = arith.extui %108 : i1 to i32
    %c0_i32_89 = arith.constant 0 : i32
    %110 = arith.cmpi ne, %109, %c0_i32_89 : i32
    scf.if %110 {
      %c0_90 = arith.constant 0 : index
      %c0_91 = arith.constant 0 : index
      %111 = vector.load %arg24[%c0_90, %c0_91] : memref<8x8xf32, #tpu.memory_space<vmem>>, vector<8x8xf32>
      tpu.vector_store %arg24[%c0_90, %c0_91], %15 {strides = array<i32>} : memref<8x8xf32, #tpu.memory_space<vmem>>, vector<8x8xf32>,
      %c0_92 = arith.constant 0 : index
      %c0_93 = arith.constant 0 : index
      %112 = vector.load %arg25[%c0_92, %c0_93] : memref<8x8xf32, #tpu.memory_space<vmem>>, vector<8x8xf32>
      tpu.vector_store %arg25[%c0_92, %c0_93], %99 {strides = array<i32>} : memref<8x8xf32, #tpu.memory_space<vmem>>, vector<8x8xf32>,
      %c0_94 = arith.constant 0 : index
      %c0_95 = arith.constant 0 : index
      %113 = vector.load %arg29[%c0_94, %c0_95] : memref<8x1xf32, #tpu.memory_space<vmem>>, vector<8x1xf32>
      %c0_96 = arith.constant 0 : index
      %c0_97 = arith.constant 0 : index
      %114 = vector.load %arg26[%c0_96, %c0_97] : memref<8x1xf32, #tpu.memory_space<vmem>>, vector<8x1xf32>
      tpu.vector_store %arg26[%c0_96, %c0_97], %113 {strides = array<i32>} : memref<8x1xf32, #tpu.memory_space<vmem>>, vector<8x1xf32>,
    } else {
    }
    return
  }
  func.func @transform_0(%arg0: i32, %arg1: i32) -> (i32, i32) {
    %c0_i32 = arith.constant 0 : i32
    %c0_i32_0 = arith.constant 0 : i32
    return %arg0, %c0_i32 : i32, i32
  }
  func.func @transform_1(%arg0: i32, %arg1: i32) -> (i32, i32) {
    %c0_i32 = arith.constant 0 : i32
    %c0_i32_0 = arith.constant 0 : i32
    return %arg0, %c0_i32 : i32, i32
  }
  func.func @transform_2(%arg0: i32, %arg1: i32) -> (i32, i32, i32) {
    %c0_i32 = arith.constant 0 : i32
    %c0_i32_0 = arith.constant 0 : i32
    %c0_i32_1 = arith.constant 0 : i32
    return %arg1, %c0_i32, %c0_i32_0 : i32, i32, i32
  }
  func.func @transform_3(%arg0: i32, %arg1: i32) -> (i32, i32, i32) {
    %c0_i32 = arith.constant 0 : i32
    %c0_i32_0 = arith.constant 0 : i32
    %c0_i32_1 = arith.constant 0 : i32
    return %arg1, %c0_i32, %c0_i32_0 : i32, i32, i32
  }
  func.func @transform_4(%arg0: i32, %arg1: i32) -> (i32, i32, i32) {
    %c0_i32 = arith.constant 0 : i32
    %c0_i32_0 = arith.constant 0 : i32
    %c0_i32_1 = arith.constant 0 : i32
    return %arg1, %c0_i32, %c0_i32_0 : i32, i32, i32
  }
  func.func @transform_5(%arg0: i32, %arg1: i32) -> (i32, i32, i32) {
    %c0_i32 = arith.constant 0 : i32
    %c0_i32_0 = arith.constant 0 : i32
    %c0_i32_1 = arith.constant 0 : i32
    return %arg1, %c0_i32, %c0_i32_0 : i32, i32, i32
  }
  func.func @transform_6(%arg0: i32, %arg1: i32) -> (i32, i32, i32) {
    %c0_i32 = arith.constant 0 : i32
    %c0_i32_0 = arith.constant 0 : i32
    %c0_i32_1 = arith.constant 0 : i32
    return %arg1, %c0_i32, %c0_i32_0 : i32, i32, i32
  }
  func.func @transform_7(%arg0: i32, %arg1: i32) -> (i32, i32, i32) {
    %c0_i32 = arith.constant 0 : i32
    %c0_i32_0 = arith.constant 0 : i32
    %c0_i32_1 = arith.constant 0 : i32
    return %arg1, %c0_i32, %c0_i32_0 : i32, i32, i32
  }
  func.func @transform_8(%arg0: i32, %arg1: i32) -> (i32, i32, i32) {
    %c0_i32 = arith.constant 0 : i32
    %c0_i32_0 = arith.constant 0 : i32
    %c0_i32_1 = arith.constant 0 : i32
    return %arg1, %c0_i32, %c0_i32_0 : i32, i32, i32
  }
  func.func @transform_9(%arg0: i32, %arg1: i32) -> (i32, i32, i32) {
    %c0_i32 = arith.constant 0 : i32
    %c0_i32_0 = arith.constant 0 : i32
    %c0_i32_1 = arith.constant 0 : i32
    return %arg1, %c0_i32, %c0_i32_0 : i32, i32, i32
  }
  func.func @transform_10(%arg0: i32, %arg1: i32) -> (i32, i32, i32) {
    %c0_i32 = arith.constant 0 : i32
    %c0_i32_0 = arith.constant 0 : i32
    %c0_i32_1 = arith.constant 0 : i32
    return %arg1, %c0_i32, %c0_i32_0 : i32, i32, i32
  }
  func.func @transform_11(%arg0: i32, %arg1: i32) -> (i32, i32, i32) {
    %c0_i32 = arith.constant 0 : i32
    %c0_i32_0 = arith.constant 0 : i32
    %c0_i32_1 = arith.constant 0 : i32
    return %arg1, %c0_i32, %c0_i32_0 : i32, i32, i32
  }
  func.func @transform_12(%arg0: i32, %arg1: i32) -> (i32, i32, i32) {
    %c0_i32 = arith.constant 0 : i32
    %c0_i32_0 = arith.constant 0 : i32
    %c0_i32_1 = arith.constant 0 : i32
    return %arg1, %c0_i32, %c0_i32_0 : i32, i32, i32
  }
  func.func @transform_13(%arg0: i32, %arg1: i32) -> (i32, i32, i32) {
    %c0_i32 = arith.constant 0 : i32
    %c0_i32_0 = arith.constant 0 : i32
    %c0_i32_1 = arith.constant 0 : i32
    return %arg1, %c0_i32, %c0_i32_0 : i32, i32, i32
  }
  func.func @transform_14(%arg0: i32, %arg1: i32) -> (i32, i32, i32) {
    %c0_i32 = arith.constant 0 : i32
    %c0_i32_0 = arith.constant 0 : i32
    %c0_i32_1 = arith.constant 0 : i32
    return %arg1, %c0_i32, %c0_i32_0 : i32, i32, i32
  }
  func.func @transform_15(%arg0: i32, %arg1: i32) -> (i32, i32, i32) {
    %c0_i32 = arith.constant 0 : i32
    %c0_i32_0 = arith.constant 0 : i32
    %c0_i32_1 = arith.constant 0 : i32
    return %arg1, %c0_i32, %c0_i32_0 : i32, i32, i32
  }
  func.func @transform_16(%arg0: i32, %arg1: i32) -> (i32, i32, i32) {
    %c0_i32 = arith.constant 0 : i32
    %c0_i32_0 = arith.constant 0 : i32
    %c0_i32_1 = arith.constant 0 : i32
    return %arg1, %c0_i32, %c0_i32_0 : i32, i32, i32
  }
  func.func @transform_17(%arg0: i32, %arg1: i32) -> (i32, i32, i32) {
    %c0_i32 = arith.constant 0 : i32
    %c0_i32_0 = arith.constant 0 : i32
    %c0_i32_1 = arith.constant 0 : i32
    return %arg1, %c0_i32, %c0_i32_0 : i32, i32, i32
  }
  func.func @transform_18(%arg0: i32, %arg1: i32) -> (i32, i32, i32) {
    %c0_i32 = arith.constant 0 : i32
    %c0_i32_0 = arith.constant 0 : i32
    %c0_i32_1 = arith.constant 0 : i32
    return %arg1, %c0_i32, %c0_i32_0 : i32, i32, i32
  }
  func.func @transform_19(%arg0: i32, %arg1: i32) -> (i32, i32, i32) {
    %c0_i32 = arith.constant 0 : i32
    %c0_i32_0 = arith.constant 0 : i32
    %c0_i32_1 = arith.constant 0 : i32
    return %arg1, %c0_i32, %c0_i32_0 : i32, i32, i32
  }
  func.func @transform_20(%arg0: i32, %arg1: i32) -> (i32, i32, i32) {
    %c0_i32 = arith.constant 0 : i32
    %c0_i32_0 = arith.constant 0 : i32
    %c0_i32_1 = arith.constant 0 : i32
    return %arg1, %c0_i32, %c0_i32_0 : i32, i32, i32
  }
  func.func @transform_21(%arg0: i32, %arg1: i32) -> (i32, i32, i32) {
    %c0_i32 = arith.constant 0 : i32
    %c0_i32_0 = arith.constant 0 : i32
    %c0_i32_1 = arith.constant 0 : i32
    return %arg1, %c0_i32, %c0_i32_0 : i32, i32, i32
  }
  func.func @transform_22(%arg0: i32, %arg1: i32) -> (i32, i32) {
    %c0_i32 = arith.constant 0 : i32
    %c0_i32_0 = arith.constant 0 : i32
    return %arg0, %c0_i32 : i32, i32
  }
  func.func @transform_23(%arg0: i32, %arg1: i32) -> (i32, i32) {
    %c0_i32 = arith.constant 0 : i32
    %c0_i32_0 = arith.constant 0 : i32
    return %arg0, %c0_i32 : i32, i32
  }
  func.func @transform_24(%arg0: i32, %arg1: i32) -> (i32, i32) {
    %c0_i32 = arith.constant 0 : i32
    %c0_i32_0 = arith.constant 0 : i32
    return %arg0, %c0_i32 : i32, i32
  }
}

</mosaic_0001>

<bundles_post_ra>
// kernel: flownet_encode.1
= control target key start
LH: loop header
LB: loop body
LE: loop exit
PB: predicated region body
PF: predicated region fallthrough
CT: control target
= control target key end

     0   :  { %s3893_s0 = inlined_call_operand.vmem [shape: f32[8,8], index: 0, kind: input, shape index: {}]   ;;  %s3894_s1 = inlined_call_operand.vmem [shape: f32[8,8], index: 1, kind: input, shape index: {}]   ;;  %s3895_s2 = inlined_call_operand.vmem [shape: f32[4,8,8], index: 2, kind: input, shape index: {}]   ;;  %s3896_s3 = inlined_call_operand.hbm [shape: f32[4,8,8], index: 3, kind: input, shape index: {}]   ;;  %s3897_s4 = inlined_call_operand.hbm [shape: f32[4,8,8], index: 4, kind: input, shape index: {}]   ;;  %s3898_s5 = inlined_call_operand.hbm [shape: f32[4,8,8], index: 5, kind: input, shape index: {}]   ;;  %s3899_s6 = inlined_call_operand.vmem [shape: f32[4,1,8], index: 6, kind: input, shape index: {}]   ;;  %s3900_s7 = inlined_call_operand.vmem [shape: f32[4,1,8], index: 7, kind: input, shape index: {}]   ;;  %s3901_s8 = inlined_call_operand.hbm [shape: bf16[4,8,128], index: 8, kind: input, shape index: {}]   ;;  %s3902_s9 = inlined_call_operand.hbm [shape: f32[4,1,128], index: 9, kind: input, shape index: {}]   ;;  %s3903_s10 = inlined_call_operand.vmem [shape: bf16[4,128,128], index: 10, kind: input, shape index: {}]   ;;  %s3904_s11 = inlined_call_operand.hbm [shape: f32[4,1,128], index: 11, kind: input, shape index: {}]   ;;  %s3905_s12 = inlined_call_operand.vmem [shape: bf16[4,128,128], index: 12, kind: input, shape index: {}]   ;;  %s3906_s13 = inlined_call_operand.hbm [shape: f32[4,1,128], index: 13, kind: input, shape index: {}]   ;;  %s3907_s14 = inlined_call_operand.hbm [shape: bf16[4,128,128], index: 14, kind: input, shape index: {}]   ;;  %s3908_s15 = inlined_call_operand.hbm [shape: f32[4,1,128], index: 15, kind: input, shape index: {}]   ;;  %s3909_s16 = inlined_call_operand.hbm [shape: bf16[4,128,128], index: 16, kind: input, shape index: {}]   ;;  %s3910_s17 = inlined_call_operand.hbm [shape: f32[4,1,128], index: 17, kind: input, shape index: {}]   ;;  %s3911_s18 = inlined_call_operand.vmem [shape: bf16[4,128,8], index: 18, kind: input, shape index: {}]   ;;  %s3912_s19 = inlined_call_operand.hbm [shape: f32[4,1,8], index: 19, kind: input, shape index: {}]   ;;  %s3913_s20 = inlined_call_operand.vmem [shape: bf16[4,128,8], index: 20, kind: input, shape index: {}]   ;;  %s3914_s21 = inlined_call_operand.hbm [shape: f32[4,1,8], index: 21, kind: input, shape index: {}]   ;;  %s3915_s22 = inlined_call_operand.vmem [shape: f32[8,8], index: 22, kind: output, shape index: {0}]   ;;  %s3916_s23 = inlined_call_operand.vmem [shape: f32[8,8], index: 23, kind: output, shape index: {1}]   ;;  %s3917_s24 = inlined_call_operand.vmem [shape: f32[8,1], index: 24, kind: output, shape index: {2}]  }
   0x1   :  { %3929 = sst [smem:[#allocation38_spill]] %s3893_s0 }
   0x2   :  { %3930 = sst [smem:[#allocation39_spill]] %s3894_s1 }
   0x3   :  { %3931 = sst [smem:[#allocation40_spill]] %s3895_s2 }
   0x4   :  { %3932 = sst [smem:[#allocation41_spill]] %s3896_s3 }
   0x5   :  { %3933 = sst [smem:[#allocation42_spill]] %s3897_s4 }
   0x6   :  { %3934 = sst [smem:[#allocation43_spill]] %s3898_s5 }
   0x7   :  { %3935 = sst [smem:[#allocation44_spill]] %s3899_s6 }
   0x8   :  { %3936 = sst [smem:[#allocation45_spill]] %s3900_s7 }
   0x9   :  { %3937 = sst [smem:[#allocation46_spill]] %s3901_s8 }
   0xa   :  { %3938 = sst [smem:[#allocation47_spill]] %s3902_s9 }
   0xb   :  { %3939 = sst [smem:[#allocation48_spill]] %s3903_s10 }
   0xc   :  { %3940 = sst [smem:[#allocation49_spill]] %s3904_s11 }
   0xd   :  { %3941 = sst [smem:[#allocation50_spill]] %s3905_s12 }
   0xe   :  { %3942 = sst [smem:[#allocation51_spill]] %s3906_s13 }
   0xf   :  { %3943 = sst [smem:[#allocation52_spill]] %s3907_s14 }
  0x10   :  { %3944 = sst [smem:[#allocation53_spill]] %s3908_s15 }
  0x11   :  { %3945 = sst [smem:[#allocation54_spill]] %s3909_s16 }
  0x12   :  { %3946 = sst [smem:[#allocation55_spill]] %s3910_s17 }
  0x13   :  { %3947 = sst [smem:[#allocation56_spill]] %s3911_s18 }
  0x14   :  { %3948 = sst [smem:[#allocation57_spill]] %s3912_s19 }
  0x15   :  { %3949 = sst [smem:[#allocation58_spill]] %s3913_s20 }
  0x16   :  { %3950 = sst [smem:[#allocation59_spill]] %s3914_s21 }
  0x17   :  { %3951 = sst [smem:[#allocation60_spill]] %s3915_s22 }
  0x18   :  { %3952 = sst [smem:[#allocation61_spill]] %s3916_s23 }
  0x19   :  { %3953 = sst [smem:[#allocation62_spill]] %s3917_s24 }
  0x1a   :  { %30 = vsyncpa [#allocation6], 0 }
  0x1b   :  { %32 = vsyncpa [#allocation6 + $0x1], 0 }
  0x1c   :  { %33 = vsyncpa [#allocation8], 0 }
  0x1d   :  { %35 = vsyncpa [#allocation8 + $0x1], 0 }
  0x1e   :  { %36 = vsyncpa [#allocation11], 0 }
  0x1f   :  { %38 = vsyncpa [#allocation11 + $0x1], 0 }
  0x20   :  { %39 = vsyncpa [#allocation14], 0 }
  0x21   :  { %41 = vsyncpa [#allocation14 + $0x1], 0 }
  0x22   :  { %42 = vsyncpa [#allocation17], 0 }
  0x23   :  { %44 = vsyncpa [#allocation17 + $0x1], 0 }
  0x24   :  { %45 = vsyncpa [#allocation20], 0 }
  0x25   :  { %47 = vsyncpa [#allocation20 + $0x1], 0 }
  0x26   :  { %48 = vsyncpa [#allocation23], 0 }
  0x27   :  { %50 = vsyncpa [#allocation23 + $0x1], 0  ;;  %s3473_s5 = smov 0   ;;  %s3475_s26 = smov 0  }
  0x28   :  { %s3477_s27 = smov 0   ;;  %s3479_s28 = smov 0  }
  0x29   :  { %s3481_s6 = smov 0   ;;  %s3483_s2 = smov 0  }
  0x2a LB: > { %3954 = sst [smem:[#allocation32_spill]] %s3331_s27  ;;  %s3918_s29 = sadd.s32 4294967295, %s3343_s2   ;;  %s3343_s2 = sphi %s3483_s2, %s56_s2   ;;  %s3339_s6 = sphi %s3481_s6, %s4009_s6   ;;  %s3335_s28 = sphi %s3479_s28, %s4008_s28   ;;  %s3331_s27 = sphi %s3477_s27, %s4007_s27   ;;  %s3327_s26 = sphi %s3475_s26, %s4011_s26   ;;  %s3323_s5 = sphi %s3473_s5, %s4010_s5  }
  0x2b   : > { %3955 = sst [smem:[#allocation33_spill]] %s3335_s28  ;;  %s65_s0 = sadd.s32 1, %s3339_s6 }
  0x2c   : > { %3956 = sst [smem:[#allocation34_spill]] %s3339_s6  ;;  %p66_p0 = scmp.ge.s32.totalorder %s65_s0, 4 }
  0x2d   : > { %s153_s7 = sadd.s32 1, %s3331_s27  ;;  %p160_p1 = scmp.ne.s32.totalorder %s3331_s27, %s3327_s26 }
  0x2e   : > { %p161_p2 = scmp.eq.s32.totalorder %s3343_s2, 0  ;;  %s4013_s0 = smov (%p66_p0, %s65_s0), 0 }
  0x2f   : > { %3957 = sst [smem:[#allocation35_spill]] %s4013_s0  ;;  %p166_p4 = scmp.ne.s32.totalorder %s3327_s26, %s3323_s5 }
  0x30   : > { %p3509_p3 = por %p161_p2, %p160_p1  ;;  %s150_s3 = ssub.s32 %s3339_s6, %s4013_s0 }
  0x31   : > { %p167_p5 = scmp.eq.s32.totalorder %s3918_s29, 0  ;;  %p151_p6 = scmp.eq.s32.totalorder %s150_s3, 0 }
  0x32   : > { %p2521_p8 = scmp.ge.s32.totalorder %s3343_s2, 4 }
  0x33   : > { %p3518_p7 = por %p167_p5, %p166_p4  ;;  %s3527_s4 = sand.u32 (!%p2521_p8), 1, %s3331_s27  }
  0x34   : > { %s3523_s8 = scalar_select %p151_p6, %s3331_s27, %s153_s7  }
  0x35   : > { %s3959_s25 = scalar_select %p3518_p7, 1, 0 }
  0x36   : > { %3961 = sst [smem:[#allocation37_spill]] %s3523_s8  ;;  %746 = sbr.rel (%p2521_p8) target bundleno = 112 (0x70), region = 24 }
  0x37   : > { %3960 = sst [smem:[#allocation36_spill]] %s3959_s25  ;;  %s3530_s1 = sshll.u32 (!%p2521_p8), %s3339_s6, 3 }
  0x38   : > { %s3533_s5 = sshll.u32 (!%p2521_p8), %s3527_s4, 3  ;;  %s3536_s7 = sand.u32 (!%p2521_p8), 1, %s3343_s2  }
  0x39   : > { %s3962_s0 = sld [smem:[#allocation42_spill]] (!%p2521_p8)  ;;  %s780_s24 = scalar_lea.vmem (!%p2521_p8), [#allocation7], %s3533_s5 }
  0x3a   : > { %s788_s27 = sshll.u32 (!%p2521_p8), %s780_s24, 4  ;;  %s3922_s22 = scalar_lea.sflag (!%p2521_p8), [#allocation8], %s3536_s7  ;;  %s789_s27 = int_to_ptr.vmem [resolvable:$true] %s788_s27 }
  0x3b   : > { %s2528_s20 = sshll.u32 %s3527_s4, 2  ;;  %s2529_s29 = sshll.u32 %s3339_s6, 2 }
  0x3c   : > { %s3925_s28 = scalar_lea.sflag [#allocation11], %s3536_s7  ;;  %s3964_s11 = sld [smem:[#allocation49_spill]] }
  0x3d   : > { %s873_s18 = scalar_lea.vmem [#allocation13], %s3527_s4  ;;  %s3965_s14 = sld [smem:[#allocation52_spill]] }
  0x3e   : > { %s880_s3 = sshll.u32 %s873_s18, 4  ;;  %s3345_s18 = smov 64   ;;  %s881_s3 = int_to_ptr.vmem [resolvable:$true] %s880_s3 }
  0x3f   : > { %s784_s8 = scalar_lea.hbm %s3962_s0, %s3530_s1  ;;  %s3963_s0 = sld [smem:[#allocation46_spill]] }
  0x40   : > { %s786_s23 = sshll.u32 %s784_s8, 4  ;;  %s830_s8 = scalar_lea.vmem [#allocation10], %s2528_s20  ;;  %s787_s23 = int_to_ptr.hbm [resolvable:$true] %s786_s23 }
  0x41   : > { %2812 = dma.hbm_to_vmem [thread:$0]  (%p3509_p3), %s787_s23, 128, %s789_s27, %s3922_s22  }
  0x42   : > { %s838_s10 = sshll.u32 %s830_s8, 4  ;;  %s876_s22 = scalar_lea.hbm %s3964_s11, %s3339_s6  ;;  %s839_s10 = int_to_ptr.vmem [resolvable:$true] %s838_s10 }
  0x43   : > { %s878_s25 = sshll.u32 %s876_s22, 4  ;;  %s2530_s20 = sshll.u32 %s3527_s4, 6  ;;  %s879_s25 = int_to_ptr.hbm [resolvable:$true] %s878_s25 }
  0x44   : > { %s916_s23 = scalar_lea.vmem [#allocation16], %s2530_s20  ;;  %s913_s27 = scalar_lea.sflag [#allocation17], %s3536_s7 }
  0x45   : > { %s834_s12 = scalar_lea.hbm %s3963_s0, %s2529_s29  ;;  %s2757_s29 = sshll.u32 %s3339_s6, 6 }
  0x46   : > { %s836_s24 = sshll.u32 %s834_s12, 4  ;;  %s3926_s12 = scalar_lea.sflag [#allocation14], %s3536_s7  ;;  %s837_s24 = int_to_ptr.hbm [resolvable:$true] %s836_s24 }
  0x47   : > { %2814 = dma.hbm_to_vmem [thread:$0]  (%p3509_p3), %s837_s24, 64, %s839_s10, %s3925_s28  }
  0x48   : > { %2816 = dma.hbm_to_vmem [thread:$0]  (%p3509_p3), %s879_s25, 16, %s881_s3, %s3926_s12  }
  0x49   : > { %s921_s24 = scalar_lea.hbm %s3965_s14, %s2757_s29  ;;  %s924_s22 = sshll.u32 %s916_s23, 4  ;;  %s925_s22 = int_to_ptr.vmem [resolvable:$true] %s924_s22 }
  0x4a   : > { %s922_s8 = sshll.u32 %s921_s24, 4  ;;  %s3346_s28 = smov 4   ;;  %s923_s8 = int_to_ptr.hbm [resolvable:$true] %s922_s8 }
  0x4b   : > { %2818 = dma.hbm_to_vmem [thread:$0]  (%p3509_p3), %s923_s8, 1024, %s925_s22, %s913_s27, %s3345_s18, %s3345_s18, %s3346_s28  }
  0x4c   : > { %s3966_s16 = sld [smem:[#allocation54_spill]]  ;;  %s955_s10 = scalar_lea.vmem [#allocation19], %s2530_s20 }
  0x4d   : > { %s963_s24 = sshll.u32 %s955_s10, 4  ;;  %s952_s12 = scalar_lea.sflag [#allocation20], %s3536_s7  ;;  %s964_s24 = int_to_ptr.vmem [resolvable:$true] %s963_s24 }
  0x4e   : > { %s3967_s19 = sld [smem:[#allocation57_spill]]  ;;  %s3927_s3 = scalar_lea.sflag [#allocation23], %s3536_s7 }
  0x4f   : > { %s761_s10 = scalar_lea.vmem [#allocation5], %s3533_s5  ;;  %s758_s8 = scalar_lea.sflag [#allocation6], %s3527_s4 }
  0x50   : > { %s3971_s9 = sld [smem:[#allocation47_spill]] }
  0x51   : > { %s3973_s13 = sld [smem:[#allocation51_spill]] }
  0x52   : > { %s960_s0 = scalar_lea.hbm %s3966_s16, %s2757_s29  ;;  %s1001_s29 = scalar_lea.vmem [#allocation22], %s3527_s4 }
  0x53   : > { %s961_s23 = sshll.u32 %s960_s0, 4  ;;  %s1008_s20 = sshll.u32 %s1001_s29, 4  ;;  %s962_s23 = int_to_ptr.hbm [resolvable:$true] %s961_s23  ;;  %s1009_s20 = int_to_ptr.vmem [resolvable:$true] %s1008_s20 }
  0x54   : > { %2820 = dma.hbm_to_vmem [thread:$0]  (%p3509_p3), %s962_s23, 1024, %s964_s24, %s952_s12, %s3345_s18, %s3345_s18, %s3346_s28  }
  0x55   : > { %s1004_s22 = scalar_lea.hbm %s3967_s19, %s3339_s6  ;;  %s3968_s18 = sld [smem:[#allocation41_spill]] }
  0x56   : > { %s1006_s25 = sshll.u32 %s1004_s22, 4  ;;  %s769_s24 = sshll.u32 %s761_s10, 4  ;;  %s1007_s25 = int_to_ptr.hbm [resolvable:$true] %s1006_s25  ;;  %s770_s24 = int_to_ptr.vmem [resolvable:$true] %s769_s24 }
  0x57   : > { %2822 = dma.hbm_to_vmem [thread:$0]  (%p3509_p3), %s1007_s25, 16, %s1009_s20, %s3927_s3  }
  0x58   : > { %s3969_s25 = sld [smem:[#allocation43_spill]]  ;;  %s799_s0 = scalar_lea.vmem [#allocation9], %s3533_s5 }
  0x59   : > { %s807_s28 = sshll.u32 %s799_s0, 4  ;;  %s3975_s15 = sld [smem:[#allocation53_spill]]  ;;  %s808_s28 = int_to_ptr.vmem [resolvable:$true] %s807_s28 }
  0x5a   : > { %s3976_s17 = sld [smem:[#allocation55_spill]]  ;;  %s976_s29 = scalar_lea.vmem [#allocation21], %s3527_s4 }
  0x5b   : > { %s765_s11 = scalar_lea.hbm %s3968_s18, %s3530_s1  ;;  %s3977_s21 = sld [smem:[#allocation59_spill]] }
  0x5c   : > { %s767_s23 = sshll.u32 %s765_s11, 4  ;;  %s3970_s11 = scalar_lea.sflag [#allocation8], %s3536_s7  ;;  %s768_s23 = int_to_ptr.hbm [resolvable:$true] %s767_s23 }
  0x5d   : > { %2811 = dma.hbm_to_vmem [thread:$0]  (%p3509_p3), %s768_s23, 128, %s770_s24, %s758_s8  }
  0x5e   : > { %s803_s20 = scalar_lea.hbm %s3969_s25, %s3530_s1  ;;  %s851_s24 = scalar_lea.hbm %s3971_s9, %s3339_s6 }
  0x5f   : > { %s805_s18 = sshll.u32 %s803_s20, 4  ;;  %s848_s23 = scalar_lea.vmem [#allocation12], %s3527_s4  ;;  %s806_s18 = int_to_ptr.hbm [resolvable:$true] %s805_s18 }
  0x60   : > { %2813 = dma.hbm_to_vmem [thread:$0]  (%p3509_p3), %s806_s18, 128, %s808_s28, %s3970_s11  }
  0x61   : > { %s855_s8 = sshll.u32 %s848_s23, 4  ;;  %s853_s22 = sshll.u32 %s851_s24, 4  ;;  %s856_s8 = int_to_ptr.vmem [resolvable:$true] %s855_s8  ;;  %s854_s22 = int_to_ptr.hbm [resolvable:$true] %s853_s22 }
  0x62   : > { %s3972_s1 = scalar_lea.sflag [#allocation11], %s3536_s7  ;;  %s901_s25 = scalar_lea.hbm %s3973_s13, %s3339_s6 }
  0x63   : > { %2815 = dma.hbm_to_vmem [thread:$0]  (%p3509_p3), %s854_s22, 16, %s856_s8, %s3972_s1  }
  0x64   : > { %s898_s20 = scalar_lea.vmem [#allocation15], %s3527_s4  ;;  %s903_s0 = sshll.u32 %s901_s25, 4  ;;  %s904_s0 = int_to_ptr.hbm [resolvable:$true] %s903_s0 }
  0x65   : > { %s905_s3 = sshll.u32 %s898_s20, 4  ;;  %s3974_s28 = scalar_lea.sflag [#allocation14], %s3536_s7  ;;  %s906_s3 = int_to_ptr.vmem [resolvable:$true] %s905_s3 }
  0x66   : > { %2817 = dma.hbm_to_vmem [thread:$0]  (%p3509_p3), %s904_s0, 16, %s906_s3, %s3974_s28  }
  0x67   : > { %s940_s10 = scalar_lea.hbm %s3975_s15, %s3339_s6  ;;  %s937_s24 = scalar_lea.vmem [#allocation18], %s3527_s4 }
  0x68   : > { %s944_s23 = sshll.u32 %s937_s24, 4  ;;  %s942_s8 = sshll.u32 %s940_s10, 4  ;;  %s945_s23 = int_to_ptr.vmem [resolvable:$true] %s944_s23  ;;  %s943_s8 = int_to_ptr.hbm [resolvable:$true] %s942_s8 }
  0x69   : > { %2819 = dma.hbm_to_vmem [thread:$0]  (%p3509_p3), %s943_s8, 16, %s945_s23, %s913_s27  }
  0x6a   : > { %s979_s5 = scalar_lea.hbm %s3976_s17, %s3339_s6  ;;  %s983_s25 = sshll.u32 %s976_s29, 4  ;;  %s984_s25 = int_to_ptr.vmem [resolvable:$true] %s983_s25 }
  0x6b   : > { %s981_s20 = sshll.u32 %s979_s5, 4  ;;  %s1029_s28 = scalar_lea.hbm %s3977_s21, %s3339_s6  ;;  %s982_s20 = int_to_ptr.hbm [resolvable:$true] %s981_s20 }
  0x6c   : > { %2821 = dma.hbm_to_vmem [thread:$0]  (%p3509_p3), %s982_s20, 16, %s984_s25, %s952_s12  }
  0x6d   : > { %s1026_s18 = scalar_lea.vmem [#allocation24], %s3527_s4  ;;  %s1031_s10 = sshll.u32 %s1029_s28, 4  ;;  %s1032_s10 = int_to_ptr.hbm [resolvable:$true] %s1031_s10 }
  0x6e   : > { %s1033_s11 = sshll.u32 %s1026_s18, 4  ;;  %s3978_s27 = scalar_lea.sflag [#allocation23], %s3536_s7  ;;  %s1034_s11 = int_to_ptr.vmem [resolvable:$true] %s1033_s11 }
  0x6f   : > { %2823 = dma.hbm_to_vmem [thread:$0]  (%p3509_p3), %s1032_s10, 16, %s1034_s11, %s3978_s27  }
  0x70 PF: > { %p2536_p9 = scmp.ge.s32.totalorder %s3343_s2, 1  ;;  %p1038_p10 = scmp.lt.s32.totalorder %s3343_s2, 5 }
  0x72   : > { %p1039_p11 = pnand %p2536_p9, %p1038_p10 }
  0x73   : > { %s3661_s24 = sand.u32 (!%p1039_p11), 1, %s3327_s26  }
  0x74   : > { %1042 = sbr.rel (%p1039_p11) target bundleno = 1284 (0x504), region = 108  ;;  %s3664_s4 = sshll.u32 (!%p1039_p11), %s3661_s24, 3 }
  0x75   : > { %s1045_s23 = scalar_lea.sflag (!%p1039_p11), [#allocation6], %s3661_s24 }
  0x79   : > { %3294 = dma.done.wait (%p3518_p7), %s1045_s23, 128  }
  0x7a   : > { %3296 = vsyncadd (%p3518_p7), %s1045_s23, 4294967168  ;;  %s3980_s7 = sadd.s32 4294967295, %s3343_s2  }
  0x7b   : > { %s3674_s8 = sand.u32 1, %s3980_s7  }
  0x7c   : > { %s1055_s22 = scalar_lea.sflag [#allocation8], %s3674_s8 }
  0x7d   : > { %3298 = dma.done.wait (%p3518_p7), %s1055_s22, 256  }
  0x7e   : > { %3300 = vsyncadd (%p3518_p7), %s1055_s22, 4294967040  ;;  %s2540_s5 = sshll.u32 %s3661_s24, 2  ;;  %s1075_s25 = scalar_lea.sflag [#allocation11], %s3674_s8 }
  0x7f   : > { %s3685_s20 = scalar_lea.vmem [#allocation10], %s2540_s5 }
  0x80   : > { %3302 = dma.done.wait (%p3518_p7), %s1075_s25, 80  }
  0x81   : > { %3304 = vsyncadd (%p3518_p7), %s1075_s25, 4294967216  ;;  %s1094_s0 = scalar_lea.sflag [#allocation14], %s3674_s8 }
  0x82   : > { %3306 = dma.done.wait (%p3518_p7), %s1094_s0, 32  }
  0x83   : > { %3308 = vsyncadd (%p3518_p7), %s1094_s0, 4294967264  ;;  %s2541_s18 = sshll.u32 %s3661_s24, 6  ;;  %s1112_s10 = scalar_lea.sflag [#allocation17], %s3674_s8 }
  0x84   : > { %s3701_s27 = scalar_lea.vmem [#allocation16], %s2541_s18 }
  0x85   : > { %3310 = dma.done.wait (%p3518_p7), %s1112_s10, 1040  }
  0x86   : > { %3312 = vsyncadd (%p3518_p7), %s1112_s10, 4294966256  ;;  %s1131_s7 = scalar_lea.sflag [#allocation20], %s3674_s8  ;;  %s3709_s22 = scalar_lea.vmem [#allocation19], %s2541_s18 }
  0x87   : > { %3314 = dma.done.wait (%p3518_p7), %s1131_s7, 1040  }
  0x88   : > { %3316 = vsyncadd (%p3518_p7), %s1131_s7, 4294966256  ;;  %s1150_s25 = scalar_lea.sflag [#allocation23], %s3674_s8 }
  0x89   : > { %3318 = dma.done.wait (%p3518_p7), %s1150_s25, 32  }
  0x8a   : > { %3320 = vsyncadd (%p3518_p7), %s1150_s25, 4294967264  ;;  %s3981_s10 = sld [smem:[#allocation33_spill]] }
  0x8b   : > { %s3982_s8 = sld [smem:[#allocation44_spill]] }
  0x8c   : > { %s3983_s3 = sld [smem:[#allocation40_spill]] }
  0x8d   : > { %s3984_s29 = sld [smem:[#allocation45_spill]] }
  0x8e   : > { %s3985_s15 = sld [smem:[#allocation48_spill]] }
  0x8f   : > { %s3986_s21 = sld [smem:[#allocation50_spill]] }
  0x90   : > { %p1333_p12 = scmp.lt.s32.totalorder %s3981_s10, 3  ;;  %s3988_s30 = sld [smem:[#allocation58_spill]] }
  0x91   : > { %p2552_p13 = scmp.ne.s32.totalorder %s3981_s10, 0 }
  0x92   : > { %s3724_s18 = scalar_select %p1333_p12, %s3981_s10, 3 }
  0x94   : > { %s2543_s7 = sshll.u32 %s3724_s18, 3  ;;  %s1339_s0 = scalar_lea.vmem %s3982_s8, %s3724_s18 }
  0x95   : > { %s1336_s12 = scalar_lea.vmem %s3983_s3, %s2543_s7  ;;  %s1342_s1 = scalar_lea.vmem %s3984_s29, %s3724_s18 }
  0x96   : > { %s2759_s9 = sshll.u32 %s3724_s18, 6  ;;  %s3987_s8 = sld [smem:[#allocation56_spill]] }
  0x97   : > { %s3742_s16 = scalar_lea.vmem %s3985_s15, %s2759_s9  ;;  %s3747_s6 = scalar_lea.vmem %s3986_s21, %s2759_s9 }
  0x98   : > { %s3757_s29 = scalar_lea.vmem %s3988_s30, %s2759_s9  ;;  %s1161_s7 = scalar_lea.vmem [#allocation24], %s3661_s24 }
  0x99   : > { %1379 = sbr.rel (%p2552_p13) target bundleno = 162 (0xa2), region = 164  ;;  %s3989_s15 = sld [smem:[#allocation38_spill]] (!%p2552_p13) }
  0x9a   : > { %s3990_s21 = sld [smem:[#allocation39_spill]] (!%p2552_p13) }
  0x9c   : > { %s3752_s28 = scalar_lea.vmem %s3987_s8, %s2759_s9 }
  0x9e   : > { %vm1381_vm0 = vcmask 64512   ;;  %vm1385_vm1 = vcmask 7168   ;;  %v3347_v2 = vmov 0.0  }
  0x9f   : > { %v1380_v0 = vld [vmem:[%s3989_s15] sm:$0xff]  ;;  %1386 = vst.msk [vmem:[#allocation4] sm:$0xff] %vm1385_vm1, %v3347_v2 }
  0xa0   : > { %v1383_v1 = vld [vmem:[%s3990_s21] sm:$0xff]  ;;  %1382 = vst.msk [vmem:[#allocation2] sm:$0xff] %vm1381_vm0, %v1380_v0 }
  0xa1   : > { %1384 = vst.msk [vmem:[#allocation3] sm:$0xff] %vm1381_vm0, %v1383_v1 }
  0xa2 PF: > { %v1389_v3 = vld [vmem:[%s1336_s12] sm:$0xff]  ;;  %vm1391_vm2 = vcmask 64512   ;;  %s3991_s9 = scalar_lea.vmem [#allocation7], %s3664_s4  ;;  %vm1499_vm3 = vcmask 1043456   ;;  %s3992_s10 = scalar_lea.vmem [#allocation9], %s3664_s4  ;;  %v2770_v11 = vld [vmem:[%s3742_s16 + $0x38] sm:$0xff] }
  0xa3   : > { %v1390_v5 = vld [vmem:[%s3991_s9] sm:$0xff]  ;;  %1433 = vmatpush.msra.mxu3 %v1389_v3  ;;  %v1444_v7 = vld [vmem:[%s3992_s10] sm:$0xff]  ;;  %s3993_s25 = scalar_lea.vmem [#allocation5], %s3664_s4  ;;  %1586 = vmatpush.bf16.msra.mxu1 %v2770_v11  ;;  %s4000_s23 = scalar_lea.vmem [#allocation22], %s3661_s24  ;;  %vm2041_vm8 = vcmask 7168  }
  0xa4   : > { %1410 = vmatpush.msra.mxu0 %v1390_v5  ;;  %v1443_v8 = vld [vmem:[%s3993_s25] sm:$0xff]  ;;  %v1491_v9 = vld [vmem:[%s3685_s20] sm:$0xf]  ;;  %v2769_v12 = vld [vmem:[%s3742_s16 + $0x30] sm:$0xff] }
  0xa5   : > { %1480 = vmatpush.msrb.mxu3 %v1443_v8  ;;  %v1501_v10 = vsel %vm1499_vm3, %v1491_v9, 0  ;;  %v2768_v13 = vld [vmem:[%s3742_s16 + $0x28] sm:$0xff]  ;;  %v2767_v14 = vld [vmem:[%s3742_s16 + $0x20] sm:$0xff]  ;;  %v2766_v15 = vld [vmem:[%s3742_s16 + $0x18] sm:$0xff] }
  0xa6   : > { %1460 = vmatpush.msrb.mxu0 %v1444_v7  ;;  %v2765_v16 = vld [vmem:[%s3742_s16 + $0x10] sm:$0xff]  ;;  %v2888_v18 = vld [vmem:[%s1339_s0] ss:$0 sm:$0xff]  ;;  %v2764_v23 = vld [vmem:[%s3742_s16 + $0x8] sm:$0xff]  ;;  %s3995_s0 = scalar_lea.vmem [#allocation12], %s3661_s24 }
  0xa7   : > { %v1387_v4 = vld [vmem:[#allocation2] sm:$0xff]  ;;  %1587 = vmatpush.bf16.msra.mxu1 %v2769_v12  ;;  %v2778_v25 = vld [vmem:[%s3747_s6 + $0x38] sm:$0xff]  ;;  %v2777_v26 = vld [vmem:[%s3747_s6 + $0x30] sm:$0xff] }
  0xa8   : > { %v1388_v6 = vld [vmem:[#allocation3] sm:$0xff]  ;;  %2554 = vmatmul.msk.f32.vlgmr.msra.gmra.mxu3 %vm1391_vm2, %v1387_v4  ;;  %v2763_v24 = vld [vmem:[%s3742_s16] sm:$0xff]  ;;  %1669 = vmatpush.bf16.msra.mxu2 %v2778_v25  ;;  %v2774_v30 = vld [vmem:[%s3747_s6 + $0x18] sm:$0xff]  ;;  %s3996_s16 = scalar_lea.vmem [#allocation13], %s3661_s24 }
  0xa9   : > { %2553 = vmatmul.msk.f32.vlgmr.msra.gmra.mxu0 %vm1391_vm2, %v1388_v6  ;;  %v2776_v27 = vld [vmem:[%s3747_s6 + $0x28] sm:$0xff]  ;;  %v2775_v28 = vld [vmem:[%s3747_s6 + $0x20] sm:$0xff]  ;;  %v2773_v31 = vld [vmem:[%s3747_s6 + $0x10] sm:$0xff] }
  0xaa   : > { %1510 = vmatpush.bf16.msra.mxu0 %v1501_v10  ;;  %v2890_v32 = vld [vmem:[%s3995_s0] ss:$0 sm:$0xff]  ;;  %v2772_v38 = vld [vmem:[%s3747_s6 + $0x8] sm:$0xff]  ;;  %v2783_v43 = vld [vmem:[%s3701_s27 + $0x20] sm:$0xff] }
  0xab   : > { %1588 = vmatpush.bf16.msra.mxu1 %v2768_v13  ;;  %v2771_v39 = vld [vmem:[%s3747_s6] sm:$0xff]  ;;  %v2786_v40 = vld [vmem:[%s3701_s27 + $0x38] sm:$0xff]  ;;  %v2779_v53 = vld [vmem:[%s3701_s27] sm:$0xff]  ;;  %s3997_s6 = scalar_lea.vmem [#allocation15], %s3661_s24 }
  0xac   : > { %1670 = vmatpush.bf16.msra.mxu2 %v2777_v26  ;;  %1752 = vmatpush.bf16.msra.mxu3 %v2786_v40  ;;  %v2785_v41 = vld [vmem:[%s3701_s27 + $0x30] sm:$0xff]  ;;  %v2784_v42 = vld [vmem:[%s3701_s27 + $0x28] sm:$0xff]  ;;  %v2782_v44 = vld [vmem:[%s3701_s27 + $0x18] sm:$0xff] }
  0xad   : > { %v2781_v45 = vld [vmem:[%s3701_s27 + $0x10] sm:$0xff]  ;;  %v2891_v46 = vld [vmem:[%s3996_s16] ss:$0 sm:$0xff]  ;;  %v2794_v54 = vld [vmem:[%s3709_s22 + $0x38] sm:$0xff] }
  0xae   : > { %v2780_v52 = vld [vmem:[%s3701_s27 + $0x8] sm:$0xff]  ;;  %v2793_v55 = vld [vmem:[%s3709_s22 + $0x30] sm:$0xff]  ;;  %v2790_v58 = vld [vmem:[%s3709_s22 + $0x18] sm:$0xff]  ;;  %s3998_s27 = scalar_lea.vmem [#allocation18], %s3661_s24 }
  0xaf   : > { %1589 = vmatpush.bf16.msra.mxu1 %v2767_v14  ;;  %v2792_v56 = vld [vmem:[%s3709_s22 + $0x28] sm:$0xff]  ;;  %v2791_v57 = vld [vmem:[%s3709_s22 + $0x20] sm:$0xff]  ;;  %v2789_v59 = vld [vmem:[%s3709_s22 + $0x10] sm:$0xff] }
  0xb0   : > { %2556 = vmatmul.msk.f32.vlgmr.msrb.gmra.mxu3 %vm1391_vm2, %v1387_v4  ;;  %1671 = vmatpush.bf16.msra.mxu2 %v2776_v27  ;;  %v2892_v60 = vld [vmem:[%s3997_s6] ss:$0 sm:$0xff]  ;;  %v2787_v3 = vld [vmem:[%s3709_s22] sm:$0xff]  ;;  %v2809_v7 = vld [vmem:[%s3757_s29 + $0x30] sm:$0xff] }
  0xb1   : > { %2555 = vmatmul.msk.f32.vlgmr.msrb.gmra.mxu0 %vm1391_vm2, %v1388_v6  ;;  %1753 = vmatpush.bf16.msra.mxu3 %v2785_v41  ;;  %v2788_v2 = vld [vmem:[%s3709_s22 + $0x8] sm:$0xff]  ;;  %v2802_v4 = vld [vmem:[%s3752_s28 + $0x38] sm:$0xff]  ;;  %v2801_v6 = vld [vmem:[%s3752_s28 + $0x30] sm:$0xff]  ;;  %s3999_s22 = scalar_lea.vmem [#allocation21], %s3661_s24  ;;  %s4002_s24 = sld [smem:[#allocation33_spill]] }
  0xb2   : > { %1835 = vmatpush.bf16.msrb.mxu0 %v2794_v54  ;;  %v2810_v5 = vld [vmem:[%s3757_s29 + $0x38] sm:$0xff]  ;;  %v2800_v8 = vld [vmem:[%s3752_s28 + $0x28] sm:$0xff]  ;;  %v2799_v10 = vld [vmem:[%s3752_s28 + $0x20] sm:$0xff] }
  0xb3   : > { %1590 = vmatpush.bf16.msra.mxu1 %v2766_v15  ;;  %v2808_v9 = vld [vmem:[%s3757_s29 + $0x28] sm:$0xff]  ;;  %v2807_v11 = vld [vmem:[%s3757_s29 + $0x20] sm:$0xff]  ;;  %v2798_v12 = vld [vmem:[%s3752_s28 + $0x18] sm:$0xff] }
  0xb4   : > { %1672 = vmatpush.bf16.msra.mxu2 %v2775_v28  ;;  %v2806_v13 = vld [vmem:[%s3757_s29 + $0x18] sm:$0xff]  ;;  %v2893_v15 = vld [vmem:[%s3998_s27] ss:$0 sm:$0xff]  ;;  %v2804_v25 = vld [vmem:[%s3757_s29 + $0x8] sm:$0xff] }
  0xb5   : > { %1754 = vmatpush.bf16.msra.mxu3 %v2784_v42  ;;  %v2795_v26 = vld [vmem:[%s3752_s28] sm:$0xff] }
  0xb6   : > { %1836 = vmatpush.bf16.msrb.mxu0 %v2793_v55  ;;  %v2803_v27 = vld [vmem:[%s3757_s29] sm:$0xff] }
  0xb7   : > { %1591 = vmatpush.bf16.msra.mxu1 %v2765_v16  ;;  %v2894_v28 = vld [vmem:[%s3999_s22] ss:$0 sm:$0xff]  ;;  %p2751_p0 = scmp.ne.s32.totalorder %s4002_s24, 3 }
  0xb8   : > { %1673 = vmatpush.bf16.msra.mxu2 %v2774_v30  ;;  %s4003_s3 = sld [smem:[#allocation60_spill]] (!%p2751_p0) }
  0xb9   : > { %1755 = vmatpush.bf16.msra.mxu3 %v2783_v43  ;;  %s4005_s14 = sld [smem:[#allocation62_spill]] (!%p2751_p0) }
  0xba   : > { %1837 = vmatpush.bf16.msrb.mxu0 %v2792_v56 }
  0xbb   : > { %1592 = vmatpush.bf16.msra.mxu1 %v2764_v23  ;;  %v2805_v23 = vld [vmem:[%s3757_s29 + $0x10] sm:$0xff]  ;;  %s4004_s29 = sld [smem:[#allocation61_spill]] (!%p2751_p0) }
  0xbc   : > { %1674 = vmatpush.bf16.msra.mxu2 %v2773_v31 }
  0xbd   : > { %1756 = vmatpush.bf16.msra.mxu3 %v2782_v44 }
  0xbe   : > { %1838 = vmatpush.bf16.msrb.mxu0 %v2791_v57 }
  0xbf   : > { %1593 = vmatpush.bf16.msra.mxu1 %v2763_v24  ;;  %v2796_v24 = vld [vmem:[%s3752_s28 + $0x8] sm:$0xff] }
  0xc0   : > { %1675 = vmatpush.bf16.msra.mxu2 %v2772_v38 }
  0xc1   : > { %1757 = vmatpush.bf16.msra.mxu3 %v2781_v45 }
  0xc2   : > { %1839 = vmatpush.bf16.msrb.mxu0 %v2790_v58 }
  0xc3   : > { %1918 = vmatpush.bf16.msrb.mxu1 %v2802_v4 }
  0xc4   : > { %1676 = vmatpush.bf16.msra.mxu2 %v2771_v39 }
  0xc5   : > { %1758 = vmatpush.bf16.msra.mxu3 %v2780_v52 }
  0xc6   : > { %1840 = vmatpush.bf16.msrb.mxu0 %v2789_v59 }
  0xc7   : > { %1919 = vmatpush.bf16.msrb.mxu1 %v2801_v6 }
  0xc8   : > { %1999 = vmatpush.bf16.msrb.mxu2 %v2810_v5 }
  0xc9   : > { %1759 = vmatpush.bf16.msra.mxu3 %v2779_v53 }
  0xca   : > { %1841 = vmatpush.bf16.msrb.mxu0 %v2788_v2 }
  0xcb   : > { %1920 = vmatpush.bf16.msrb.mxu1 %v2800_v8 }
  0xcc   : > { %2000 = vmatpush.bf16.msrb.mxu2 %v2809_v7 }
  0xce   : > { %1842 = vmatpush.bf16.msrb.mxu0 %v2787_v3 }
  0xcf   : > { %1921 = vmatpush.bf16.msrb.mxu1 %v2799_v10 }
  0xd0   : > { %2001 = vmatpush.bf16.msrb.mxu2 %v2808_v9 }
  0xd3   : > { %1922 = vmatpush.bf16.msrb.mxu1 %v2798_v12 }
  0xd4   : > { %2002 = vmatpush.bf16.msrb.mxu2 %v2807_v11 }
  0xd8   : > { %2003 = vmatpush.bf16.msrb.mxu2 %v2806_v13 }
  0xdc   : > { %2004 = vmatpush.bf16.msrb.mxu2 %v2805_v23 }
  0xe0   : > { %2005 = vmatpush.bf16.msrb.mxu2 %v2804_v25 }
  0xe4   : > { %2006 = vmatpush.bf16.msrb.mxu2 %v2803_v27 }
 0x126   : > { %v1412_v17 = vpop.f32.mrf.mxu0 }
 0x12b   : > { %v1435_v19 = vpop.f32.mrf.mxu3 }
 0x12c   : > { %v1436_v20 = vadd.f32 %v1435_v19, %v1412_v17 }
 0x12e   : > { %v3789_v21 = vadd.f32 %v2888_v18, %v1436_v20  ;;  %v3802_v29 = vpop.f32.mrf.mxu0 }
 0x130   : > { %v1490_v22 = vpack.c.bf16 %v3789_v21, %v3789_v21  ;;  %2043 = vst.msk [vmem:[#allocation2] sm:$0xff] %vm1391_vm2, %v3789_v21 }
 0x132   : > { %2557 = vmatmul.msk.bf16.vlgmr.msra.gmra.mxu0 %vm1391_vm2, %v1490_v22  ;;  %v2797_v22 = vld [vmem:[%s3752_s28 + $0x10] sm:$0xff] }
 0x133   : > { %v1482_v14 = vpop.f32.mrf.mxu3  ;;  %1923 = vmatpush.bf16.msrb.mxu1 %v2797_v22 }
 0x137   : > { %1924 = vmatpush.bf16.msrb.mxu1 %v2796_v24 }
 0x13b   : > { %1925 = vmatpush.bf16.msrb.mxu1 %v2795_v26 }
 0x1af   : > { %v1512_v33 = vpop.f32.mrf.mxu0 }
 0x1b0   : > { %v1513_v34 = vadd.f32 %v2890_v32, %v1512_v33 }
 0x1b2   : > { %v1516_v35 = vmax.f32 %v1513_v34, 0.0 }
 0x1b4   : > { %v1517_v36 = vpack.c.bf16 %v1516_v35, %v1516_v35 }
 0x1b6   : > { %1594 = vmatmul.bf16.vlgmr.msra.gmra.mxu1 %v1517_v36  ;;  %v2896_v36 = vld [vmem:[%s1161_s7] ss:$0 sm:$0xff] }
 0x1b7   : > { %v1514_v37 = vpop.f32.mrf.mxu0 }
 0x233   : > { %v1595_v47 = vpop.f32.mrf.mxu1 }
 0x234   : > { %v1596_v48 = vadd.f32 %v2891_v46, %v1595_v47  ;;  %v2895_v46 = vld [vmem:[%s4000_s23] ss:$0 sm:$0xff] }
 0x236   : > { %v1599_v49 = vmax.f32 %v1596_v48, 0.0  ;;  %v1483_v48 = vadd.f32 %v1482_v14, %v3802_v29 }
 0x238   : > { %v1600_v50 = vpack.c.bf16 %v1599_v49, %v1599_v49  ;;  %v2889_v49 = vld [vmem:[%s1342_s1] ss:$0 sm:$0xff] }
 0x239   : > { %v1489_v55 = vadd.f32 %v2889_v49, %v1483_v48 }
 0x23a   : > { %1677 = vmatmul.bf16.vlgmr.msra.gmra.mxu2 %v1600_v50 }
 0x23b   : > { %v1597_v51 = vpop.f32.mrf.mxu1 }
 0x2bd   : > { %v1678_v61 = vpop.f32.mrf.mxu2 }
 0x2be   : > { %v1679_v62 = vadd.f32 %v2892_v60, %v1678_v61 }
 0x2c0   : > { %v1682_v63 = vmax.f32 %v1679_v62, 0.0 }
 0x2c2   : > { %v1683_v0 = vpack.c.bf16 %v1682_v63, %v1682_v63 }
 0x2c4   : > { %1760 = vmatmul.bf16.vlgmr.msra.gmra.mxu3 %v1683_v0  ;;  %v2034_v0 = vld [vmem:[#allocation4] sm:$0xff] }
 0x2c5   : > { %v1680_v1 = vpop.f32.mrf.mxu2 }
 0x347   : > { %v1761_v16 = vpop.f32.mrf.mxu3 }
 0x348   : > { %v1762_v17 = vadd.f32 %v2893_v15, %v1761_v16 }
 0x34a   : > { %v1765_v18 = vmax.f32 %v1762_v17, 0.0 }
 0x34c   : > { %v1766_v19 = vpack.c.bf16 %v1765_v18, %v1765_v18 }
 0x34e   : > { %1843 = vmatmul.bf16.vlgmr.msrb.gmra.mxu0 %v1766_v19 }
 0x34f   : > { %v1763_v20 = vpop.f32.mrf.mxu3 }
 0x3cb   : > { %v1844_v30 = vpop.f32.mrf.mxu0 }
 0x3cc   : > { %v1845_v31 = vadd.f32 %v2894_v28, %v1844_v30 }
 0x3ce   : > { %2897 = vtanh.f32 %v1845_v31 }
 0x3d3   : > { %v1846_v32 = vpop.f32.mrf.mxu0 }
 0x3d4   : > { %v2898_v33 = vpop.eup %2897 }
 0x3d5   : > { %v1849_v34 = vpack.c.bf16 %v2898_v33, %v2898_v33 }
 0x3d7   : > { %1926 = vmatmul.bf16.vlgmr.msrb.gmra.mxu1 %v1849_v34  ;;  %2007 = vmatmul.bf16.vlgmr.msrb.gmra.mxu2 %v1849_v34 }
 0x454   : > { %v1927_v35 = vpop.f32.mrf.mxu1 }
 0x455   : > { %v1928_v52 = vadd.f32 %v2895_v46, %v1927_v35 }
 0x457   : > { %v2032_v58 = vadd.f32 %v1928_v52, %v1489_v55 }
 0x45a   : > { %v2008_v37 = vpop.f32.mrf.mxu2 }
 0x45b   : > { %v2009_v38 = vadd.f32 %v2896_v36, %v2008_v37 }
 0x45c   : > { %v1929_v39 = vpop.f32.mrf.mxu1 }
 0x45d   : > { %v2012_v40 = vadd.f32 2.0, %v2009_v38 }
 0x45f   : > { %v2750_v41 = vmul.f32 -1.442695, %v2012_v40 }
 0x461   : > { %2899 = vpow2.f32 %v2750_v41 }
 0x462   : > { %v2010_v42 = vpop.f32.mrf.mxu2 }
 0x467   : > { %v2900_v43 = vpop.eup %2899 }
 0x468   : > { %v2016_v44 = vadd.f32 1.0, %v2900_v43 }
 0x46a   : > { %2901 = vrcp.f32 %v2016_v44  ;;  %v2028_v51 = vand.u32 2147483648, %v2016_v44  ;;  %v2026_v54 = vand.u32 2147483647, %v2016_v44  ;;  %vm2022_vm5 = vweird.f32 %v2016_v44 }
 0x46c   : > { %v2029_v57 = vor.u32 1.1754944e-38, %v2028_v51  ;;  %vm2027_vm7 = vcmp.eq.f32.partialorder %v2026_v54, 8.507059e+37 }
 0x470   : > { %v2902_v45 = vpop.eup %2901 }
 0x471   : > { %v2018_v47 = vmul.f32 %v2902_v45, %v2016_v44  ;;  %vm2023_vm4 = vweird.f32 %v2902_v45 }
 0x472   : > { %vm2024_vm6 = vmor %vm2022_vm5, %vm2023_vm4 }
 0x473   : > { %v2019_v50 = vsub.f32 1.0, %v2018_v47 }
 0x475   : > { %v2020_v53 = vmul.f32 %v2902_v45, %v2019_v50 }
 0x477   : > { %v2021_v56 = vadd.f32 %v2902_v45, %v2020_v53 }
 0x479   : > { %v2025_v59 = vsel %vm2024_vm6, %v2902_v45, %v2021_v56 }
 0x47a   : > { %v2030_v29 = vsel %vm2027_vm7, %v2029_v57, %v2025_v59 }
 0x47b   : > { %v2033_v60 = vmul.f32 %v2032_v58, %v2030_v29  ;;  %2903 = vlog2.f32 %v2030_v29 }
 0x47d   : > { %2044 = vst.msk [vmem:[#allocation3] sm:$0xff] %vm1391_vm2, %v2033_v60 }
 0x481   : > { %v2904_v61 = vpop.eup %2903 }
 0x482   : > { %v2036_v62 = vmul.f32 0.6931472, %v2904_v61 }
 0x484   : > { %v2037_v63 = vsel %vm1391_vm2, %v2036_v62, 0.0 }
 0x485   : > { %2038 = vadd.xlane.f32.xlu0 %v2037_v63 }
 0x4f7   : > { %2048 = sbr.rel (%p2751_p0) target bundleno = 1284 (0x504), region = 168 }
 0x4f8   : > { %v2039_v1 = vpop.xlane.xlu0 %2038 }
 0x4f9   : > { %v2040_v2 = vadd.f32 %v2039_v1, %v2034_v0 }
 0x4fb   : > { %2042 = vst.msk [vmem:[#allocation4] sm:$0xff] %vm2041_vm8, %v2040_v2 }
 0x4fc   : > { %2049 = vst.msk [vmem:[%s4003_s3] sm:$0xff] %vm1391_vm2, %v3789_v21 }
 0x4fd   : > { %2050 = vst.msk [vmem:[%s4004_s29] sm:$0xff] %vm1391_vm2, %v2033_v60 }
 0x502   : > { %v2051_v3 = vld [vmem:[#allocation4] sm:$0xff] }
 0x503   : > { %2052 = vst.msk [vmem:[%s4005_s14] sm:$0xff] %vm2041_vm8, %v2051_v3 }
 0x504 PF: > { %s56_s2 = sadd.s32 1, %s3343_s2   ;;  %s4006_s15 = sld [smem:[#allocation32_spill]] }
 0x505   : > { %p53_p1 = scmp.ge.s32.totalorder %s56_s2, 6   ;;  %s4007_s27 = sld [smem:[#allocation37_spill]] }
 0x506   : > { %s4008_s28 = sld [smem:[#allocation34_spill]]  ;;  %s4010_s5 = smov %s3327_s26 }
 0x507   : > { %s4009_s6 = sld [smem:[#allocation35_spill]]  ;;  %55 = sbr.rel (!%p53_p1) target bundleno = 42 (0x2a), region = 351 }
 0x50a   : > { %s4011_s26 = smov %s4006_s15 }
 0x50c   :  { %2100 = vsyncpa [#allocation6], 1 }
 0x50d   :  { %2102 = vsyncpa [#allocation6 + $0x1], 1 }
 0x50e   :  { %2103 = vsyncpa [#allocation8], 1 }
 0x50f   :  { %2105 = vsyncpa [#allocation8 + $0x1], 1 }
 0x510   :  { %2106 = vsyncpa [#allocation11], 1 }
 0x511   :  { %2108 = vsyncpa [#allocation11 + $0x1], 1 }
 0x512   :  { %2109 = vsyncpa [#allocation14], 1 }
 0x513   :  { %2111 = vsyncpa [#allocation14 + $0x1], 1 }
 0x514   :  { %2112 = vsyncpa [#allocation17], 1 }
 0x515   :  { %2114 = vsyncpa [#allocation17 + $0x1], 1 }
 0x516   :  { %2115 = vsyncpa [#allocation20], 1 }
 0x517   :  { %2117 = vsyncpa [#allocation20 + $0x1], 1 }
 0x518   :  { %2118 = vsyncpa [#allocation23], 1 }
 0x519   :  { %2120 = vsyncpa [#allocation23 + $0x1], 1 }

</bundles_post_ra>
